<compile_context>
chip_gen: v7x
topology: tpu7x:2x2x1
jax: 0.10.0
libtpu: 0.0.40
codegen_flags: <defaults>
</compile_context>

<pallas_src>
import functools

import jax
import jax.numpy as jnp
from jax.experimental import pallas as pl
from jax.experimental.pallas import tpu as pltpu

PATCH = 32                 # conv kernel size == stride
K = PATCH * PATCH          # 1024 contraction dim
C_OUT = 102                # measurements per group
LANE = 128                 # output-dim padding granularity
VMEM_BUDGET = 12 * 1024 * 1024   # stay under the smallest default scoped VMEM


def _round_up(a, b):
    return (a + b - 1) // b * b


def _pick_tm(M, c_pad, itemsize):
    """Largest M-tile (multiple of 256 -> full MXU rows) fitting the budget."""
    if M < 256:
        return _round_up(M, 8)
    for tm in (1024, 512, 256):
        need = (
            2 * tm * K * itemsize        # double-buffered X tile
            + 2 * tm * c_pad * 4         # double-buffered f32 out tile
            + 2 * K * c_pad * itemsize   # W_all (resident, 2 bufs worst case)
        )
        if need <= VMEM_BUDGET:
            return tm
    return 256


def _sample_kernel(x_ref, w_ref, o_ref):
    # x_ref: (TM, K)        bf16/f32 patch-row tile
    # w_ref: (K, C_pad)     fused + padded sampling matrix (resident)
    # o_ref: (TM, C_pad)    f32 measurements tile (lane-dense)
    o_ref[...] = jnp.dot(
        x_ref[...], w_ref[...], preferred_element_type=jnp.float32
    ).astype(o_ref.dtype)


@functools.partial(jax.jit, static_argnames=("n_group", "compute_dtype"))
def sample_net_forward(img, weights, *, n_group, compute_dtype=jnp.bfloat16):
    """img: (N, 1, H, W) float32 NCHW.  weights: (n_group, C_OUT, 1, 32, 32).

    Returns a tuple of n_group arrays, each (N, C_OUT, H//32, W//32) f32."""
    N, C, H, W = img.shape
    assert C == 1 and H % PATCH == 0 and W % PATCH == 0
    Hp, Wp = H // PATCH, W // PATCH
    M = N * Hp * Wp
    C_total = n_group * C_OUT
    C_pad = _round_up(C_total, LANE)

    itemsize = jnp.dtype(compute_dtype).itemsize
    TM = _pick_tm(M, C_pad, itemsize)
    M_pad = _round_up(M, TM)

    # --- glue: im2col in compute_dtype (non-overlapping 32x32 patches)
    x = img.astype(compute_dtype).reshape(N, Hp, PATCH, Wp, PATCH)
    x = x.transpose(0, 1, 3, 2, 4).reshape(M, K)            # (M, 1024)
    if M_pad != M:
        x = jnp.pad(x, ((0, M_pad - M), (0, 0)))

    # --- glue: fuse groups -> (1024, n_group*102), pad output dim to 128-mult
    w_all = weights.reshape(n_group * C_OUT, K).T.astype(compute_dtype)
    if C_pad != C_total:
        w_all = jnp.pad(w_all, ((0, 0), (0, C_pad - C_total)))

    out = pl.pallas_call(
        _sample_kernel,
        out_shape=jax.ShapeDtypeStruct((M_pad, C_pad), jnp.float32),
        grid_spec=pltpu.PrefetchScalarGridSpec(
            num_scalar_prefetch=0,
            grid=(M_pad // TM,),
            in_specs=[
                pl.BlockSpec((TM, K), lambda m: (m, 0)),       # X tile
                pl.BlockSpec((K, C_pad), lambda m: (0, 0)),    # W_all (resident)
            ],
            out_specs=pl.BlockSpec((TM, C_pad), lambda m: (m, 0)),
        ),
        compiler_params=pltpu.CompilerParams(
            dimension_semantics=("parallel",),
        ),
        cost_estimate=pl.CostEstimate(
            flops=2 * M_pad * K * C_pad,
            transcendentals=0,
            bytes_accessed=(M_pad * K + K * C_pad) * itemsize
            + M_pad * C_pad * 4,
        ),
    )(x, w_all)

    # --- glue: strip padding, split per group, back to NCHW maps
    # TODO(synk): downstream consumers could take the NHWC-like layout and
    # skip this final transpose (extra HBM pass) entirely.
    out = out[:M, :C_total]
    out = out.reshape(N, Hp, Wp, n_group, C_OUT).transpose(3, 0, 4, 1, 2)
    return tuple(out[g] for g in range(n_group))


def make_weights(n_group, key):
    """Deterministic stand-in for loadmat('./matrix/phi_0.5.mat')['phi'].

    Shape matches the PyTorch module: n_group conv weights of
    (102, 1, 32, 32) each, stacked to (n_group, 102, 1, 32, 32)."""
    phi = jax.random.normal(key, (n_group * C_OUT, K), dtype=jnp.float32)
    return phi.reshape(n_group, C_OUT, 1, PATCH, PATCH)


def _reference(img, weights, n_group, compute_dtype):
    """Plain-JAX reference of the stride-32 conv (per-patch projection),
    with operands cast to compute_dtype and f32 accumulation (to mirror the
    kernel's numerics)."""
    N, _, H, W = img.shape
    Hp, Wp = H // PATCH, W // PATCH
    x = img.reshape(N, Hp, PATCH, Wp, PATCH).transpose(0, 1, 3, 2, 4)
    x = x.reshape(N * Hp * Wp, K).astype(compute_dtype).astype(jnp.float32)
    outs = []
    for g in range(n_group):
        w = weights[g].reshape(C_OUT, K).astype(compute_dtype).astype(jnp.float32)
        o = x @ w.T
        outs.append(o.reshape(N, Hp, Wp, C_OUT).transpose(0, 3, 1, 2))
    return outs


if __name__ == "__main__":
    # sample_ratio = 0.2 -> n = 204 -> 2 groups of 102 rows each
    n_group = 2
    N, H, W = 2, 64, 64   # small image: 2x2 patches of 32x32

    key = jax.random.PRNGKey(0)
    k_img, k_w = jax.random.split(key)
    img = jax.random.normal(k_img, (N, 1, H, W), dtype=jnp.float32)
    weights = make_weights(n_group, k_w)

    # Fast path: bf16 streamed operands, f32 accumulation.
    measurements = sample_net_forward(img, weights, n_group=n_group)
    measurements = jax.block_until_ready(measurements)
    refs_bf16 = _reference(img, weights, n_group, jnp.bfloat16)
    for m, r in zip(measurements, refs_bf16):
        assert m.shape == (N, C_OUT, H // PATCH, W // PATCH)
        assert m.dtype == jnp.float32
        assert jnp.allclose(m, r, atol=1e-2, rtol=1e-2)

    # Exact-semantics path: f32 operands, matches the PyTorch conv tightly.
    measurements32 = sample_net_forward(
        img, weights, n_group=n_group, compute_dtype=jnp.float32
    )
    measurements32 = jax.block_until_ready(measurements32)
    refs_f32 = _reference(img, weights, n_group, jnp.float32)
    for m, r in zip(measurements32, refs_f32):
        assert m.shape == (N, C_OUT, H // PATCH, W // PATCH)
        assert jnp.allclose(m, r, atol=1e-4, rtol=1e-4)

    print("KERNEL_OK")
</pallas_src>

<mosaic_0001>
module attributes {stable_mosaic.version = 11 : i64} {
  func.func @_sample_kernel(%arg0: i32, %arg1: memref<8x1024xbf16, #tpu.memory_space<vmem>>, %arg2: memref<1024x256xbf16, #tpu.memory_space<vmem>>, %arg3: memref<8x256xf32, #tpu.memory_space<vmem>>) attributes {dimension_semantics = [#tpu.dimension_semantics<parallel>], iteration_bounds = array<i64: 1>, scalar_prefetch = 0 : i64, scratch_operands = 0 : i64, tpu.core_type = #tpu.core_type<tc>, window_params = [{transform_indices = @transform_0, window_bounds = array<i64: 8, 1024>}, {pipeline_mode = #tpu.pipeline_mode<synchronous>, transform_indices = @transform_1, window_bounds = array<i64: 1024, 256>}, {transform_indices = @transform_2, window_bounds = array<i64: 8, 256>}]} {
    %c0 = arith.constant 0 : index
    %c0_0 = arith.constant 0 : index
    %0 = vector.load %arg1[%c0, %c0_0] : memref<8x1024xbf16, #tpu.memory_space<vmem>>, vector<8x1024xbf16>
    %c0_1 = arith.constant 0 : index
    %c0_2 = arith.constant 0 : index
    %1 = vector.load %arg2[%c0_1, %c0_2] : memref<1024x256xbf16, #tpu.memory_space<vmem>>, vector<1024x256xbf16>
    %cst = arith.constant dense<0.000000e+00> : vector<8x256xf32>
    %2 = tpu.matmul %0, %1, %cst {dimension_numbers = #tpu.dot_dimension_numbers<[1], [0], [0], [1], [0, 0, 1, 1], [], []>} : vector<8x1024xbf16>, vector<1024x256xbf16>, vector<8x256xf32> -> vector<8x256xf32>
    %c0_3 = arith.constant 0 : index
    %c0_4 = arith.constant 0 : index
    %3 = vector.load %arg3[%c0_3, %c0_4] : memref<8x256xf32, #tpu.memory_space<vmem>>, vector<8x256xf32>
    tpu.vector_store %arg3[%c0_3, %c0_4], %2 {strides = array<i32>} : memref<8x256xf32, #tpu.memory_space<vmem>>, vector<8x256xf32>,
    return
  }
  func.func @transform_0(%arg0: i32) -> (i32, i32) {
    %c0_i32 = arith.constant 0 : i32
    %c0_i32_0 = arith.constant 0 : i32
    return %arg0, %c0_i32 : i32, i32
  }
  func.func @transform_1(%arg0: i32) -> (i32, i32) {
    %c0_i32 = arith.constant 0 : i32
    %c0_i32_0 = arith.constant 0 : i32
    %c0_i32_1 = arith.constant 0 : i32
    return %c0_i32, %c0_i32_0 : i32, i32
  }
  func.func @transform_2(%arg0: i32) -> (i32, i32) {
    %c0_i32 = arith.constant 0 : i32
    %c0_i32_0 = arith.constant 0 : i32
    return %arg0, %c0_i32 : i32, i32
  }
}

</mosaic_0001>

<bundles_post_ra>
// kernel: sample_net_forward.1
= control target key start
LH: loop header
LB: loop body
LE: loop exit
PB: predicated region body
PF: predicated region fallthrough
CT: control target
= control target key end

     0   :  { %s1756_s1 = inlined_call_operand.vmem [shape: bf16[1024,256], index: 1, kind: input, shape index: {}]   ;;  %s1757_s0 = inlined_call_operand.vmem [shape: bf16[8,1024], index: 0, kind: input, shape index: {}]   ;;  %s1758_s2 = inlined_call_operand.vmem [shape: f32[8,256], index: 2, kind: output, shape index: {}]  }
   0x1   :  { %v1127_v0 = vld [vmem:[%s1756_s1 + $0x4] ss:$8 sps:$4 sm:$0xff]   ;;  %v1131_v2 = vld [vmem:[%s1756_s1] ss:$8 sps:$4 sm:$0xff]   ;;  %v1133_v4 = vld [vmem:[%s1756_s1 + $0x14] ss:$8 sps:$4 sm:$0xff]  }
   0x2   :  { %v1129_v1 = vld [vmem:[%s1756_s1 + $0x204] ss:$8 sps:$4 sm:$0xff]   ;;  %811 = vmatprep.subr.bf16.mxu1 %v1127_v0  ;;  %v1132_v3 = vld [vmem:[%s1756_s1 + $0x200] ss:$8 sps:$4 sm:$0xff]   ;;  %v1135_v5 = vld [vmem:[%s1756_s1 + $0x214] ss:$8 sps:$4 sm:$0xff]  }
   0x3   :  { %893 = vmatprep.subr.bf16.mxu0 %v1129_v1  ;;  %812 = vmatpush1.bf16.msra.mxu1 %v1131_v2  ;;  %v1137_v6 = vld [vmem:[%s1756_s1 + $0x10] ss:$8 sps:$4 sm:$0xff]   ;;  %v1139_v8 = vld [vmem:[%s1756_s1 + $0x24] ss:$8 sps:$4 sm:$0xff]   ;;  %v1143_v10 = vld [vmem:[%s1756_s1 + $0x20] ss:$8 sps:$4 sm:$0xff]  }
   0x4   :  { %894 = vmatpush1.bf16.msra.mxu0 %v1132_v3  ;;  %813 = vmatprep.subr.bf16.mxu1 %v1133_v4  ;;  %v1138_v7 = vld [vmem:[%s1756_s1 + $0x210] ss:$8 sps:$4 sm:$0xff]   ;;  %v1141_v9 = vld [vmem:[%s1756_s1 + $0x224] ss:$8 sps:$4 sm:$0xff]   ;;  %v1144_v11 = vld [vmem:[%s1756_s1 + $0x220] ss:$8 sps:$4 sm:$0xff]  }
   0x5   :  { %895 = vmatprep.subr.bf16.mxu0 %v1135_v5  ;;  %v1145_v12 = vld [vmem:[%s1756_s1 + $0x34] ss:$8 sps:$4 sm:$0xff]   ;;  %v1149_v14 = vld [vmem:[%s1756_s1 + $0x30] ss:$8 sps:$4 sm:$0xff]   ;;  %v1151_v16 = vld [vmem:[%s1756_s1 + $0x44] ss:$8 sps:$4 sm:$0xff]  }
   0x6   :  { %v1147_v13 = vld [vmem:[%s1756_s1 + $0x234] ss:$8 sps:$4 sm:$0xff]   ;;  %v1150_v15 = vld [vmem:[%s1756_s1 + $0x230] ss:$8 sps:$4 sm:$0xff]   ;;  %v1153_v17 = vld [vmem:[%s1756_s1 + $0x244] ss:$8 sps:$4 sm:$0xff]  }
   0x7   :  { %814 = vmatpush1.bf16.msra.mxu1 %v1137_v6  ;;  %v1155_v18 = vld [vmem:[%s1756_s1 + $0x40] ss:$8 sps:$4 sm:$0xff]   ;;  %v1157_v20 = vld [vmem:[%s1756_s1 + $0x54] ss:$8 sps:$4 sm:$0xff]   ;;  %v1161_v22 = vld [vmem:[%s1756_s1 + $0x50] ss:$8 sps:$4 sm:$0xff]  }
   0x8   :  { %896 = vmatpush1.bf16.msra.mxu0 %v1138_v7  ;;  %815 = vmatprep.subr.bf16.mxu1 %v1139_v8  ;;  %v1156_v19 = vld [vmem:[%s1756_s1 + $0x240] ss:$8 sps:$4 sm:$0xff]   ;;  %v1159_v21 = vld [vmem:[%s1756_s1 + $0x254] ss:$8 sps:$4 sm:$0xff]   ;;  %v1162_v23 = vld [vmem:[%s1756_s1 + $0x250] ss:$8 sps:$4 sm:$0xff]  }
   0x9   :  { %897 = vmatprep.subr.bf16.mxu0 %v1141_v9  ;;  %v1163_v24 = vld [vmem:[%s1756_s1 + $0x64] ss:$8 sps:$4 sm:$0xff]   ;;  %v1167_v26 = vld [vmem:[%s1756_s1 + $0x60] ss:$8 sps:$4 sm:$0xff]   ;;  %v1169_v28 = vld [vmem:[%s1756_s1 + $0x74] ss:$8 sps:$4 sm:$0xff]  }
   0xa   :  { %v1165_v25 = vld [vmem:[%s1756_s1 + $0x264] ss:$8 sps:$4 sm:$0xff]   ;;  %v1168_v27 = vld [vmem:[%s1756_s1 + $0x260] ss:$8 sps:$4 sm:$0xff]   ;;  %v1171_v29 = vld [vmem:[%s1756_s1 + $0x274] ss:$8 sps:$4 sm:$0xff]  }
   0xb   :  { %816 = vmatpush1.bf16.msra.mxu1 %v1143_v10  ;;  %v1173_v30 = vld [vmem:[%s1756_s1 + $0x70] ss:$8 sps:$4 sm:$0xff]   ;;  %v1175_v32 = vld [vmem:[%s1756_s1 + $0x84] ss:$8 sps:$4 sm:$0xff]   ;;  %v1179_v34 = vld [vmem:[%s1756_s1 + $0x80] ss:$8 sps:$4 sm:$0xff]  }
   0xc   :  { %898 = vmatpush1.bf16.msra.mxu0 %v1144_v11  ;;  %817 = vmatprep.subr.bf16.mxu1 %v1145_v12  ;;  %v1174_v31 = vld [vmem:[%s1756_s1 + $0x270] ss:$8 sps:$4 sm:$0xff]   ;;  %v1177_v33 = vld [vmem:[%s1756_s1 + $0x284] ss:$8 sps:$4 sm:$0xff]   ;;  %v1180_v35 = vld [vmem:[%s1756_s1 + $0x280] ss:$8 sps:$4 sm:$0xff]  }
   0xd   :  { %899 = vmatprep.subr.bf16.mxu0 %v1147_v13  ;;  %v1181_v36 = vld [vmem:[%s1756_s1 + $0x94] ss:$8 sps:$4 sm:$0xff]   ;;  %v1185_v38 = vld [vmem:[%s1756_s1 + $0x90] ss:$8 sps:$4 sm:$0xff]   ;;  %v1187_v40 = vld [vmem:[%s1756_s1 + $0xa4] ss:$8 sps:$4 sm:$0xff]  }
   0xe   :  { %v1183_v37 = vld [vmem:[%s1756_s1 + $0x294] ss:$8 sps:$4 sm:$0xff]   ;;  %v1186_v39 = vld [vmem:[%s1756_s1 + $0x290] ss:$8 sps:$4 sm:$0xff]   ;;  %v1189_v41 = vld [vmem:[%s1756_s1 + $0x2a4] ss:$8 sps:$4 sm:$0xff]  }
   0xf   :  { %818 = vmatpush1.bf16.msra.mxu1 %v1149_v14  ;;  %v1191_v42 = vld [vmem:[%s1756_s1 + $0xa0] ss:$8 sps:$4 sm:$0xff]   ;;  %v1193_v44 = vld [vmem:[%s1756_s1 + $0xb4] ss:$8 sps:$4 sm:$0xff]   ;;  %v1197_v47 = vld [vmem:[%s1756_s1 + $0xb0] ss:$8 sps:$4 sm:$0xff]  }
  0x10   :  { %900 = vmatpush1.bf16.msra.mxu0 %v1150_v15  ;;  %819 = vmatprep.subr.bf16.mxu1 %v1151_v16  ;;  %v1192_v43 = vld [vmem:[%s1756_s1 + $0x2a0] ss:$8 sps:$4 sm:$0xff]   ;;  %v1195_v45 = vld [vmem:[%s1756_s1 + $0x2b4] ss:$8 sps:$4 sm:$0xff]   ;;  %v1198_v49 = vld [vmem:[%s1756_s1 + $0x2b0] ss:$8 sps:$4 sm:$0xff]  }
  0x11   :  { %901 = vmatprep.subr.bf16.mxu0 %v1153_v17  ;;  %v11_v46 = vld [vmem:[%s1757_s0] sm:$0xff]  ;;  %v13_v50 = vld [vmem:[%s1757_s0 + $0x10] sm:$0xff] }
  0x12   :  { %v982_v48 = vcombine.high %v11_v46, %v11_v46  ;;  %v1199_v51 = vld [vmem:[%s1756_s1 + $0xc4] ss:$8 sps:$4 sm:$0xff]   ;;  %v986_v53 = vcombine.high %v13_v50, %v13_v50  ;;  %v1203_v54 = vld [vmem:[%s1756_s1 + $0xc0] ss:$8 sps:$4 sm:$0xff]   ;;  %v1205_v56 = vld [vmem:[%s1756_s1 + $0xd4] ss:$8 sps:$4 sm:$0xff]   ;;  %v981_v6 = vcombine.low %v11_v46, %v11_v46  ;;  %v985_v7 = vcombine.low %v13_v50, %v13_v50 }
  0x13   :  { %820 = vmatpush1.bf16.msra.mxu1 %v1155_v18  ;;  %v1201_v52 = vld [vmem:[%s1756_s1 + $0x2c4] ss:$8 sps:$4 sm:$0xff]   ;;  %v1204_v55 = vld [vmem:[%s1756_s1 + $0x2c0] ss:$8 sps:$4 sm:$0xff]   ;;  %v1207_v57 = vld [vmem:[%s1756_s1 + $0x2d4] ss:$8 sps:$4 sm:$0xff]  }
  0x14   :  { %902 = vmatpush1.bf16.msra.mxu0 %v1156_v19  ;;  %821 = vmatprep.subr.bf16.mxu1 %v1157_v20  ;;  %v1209_v58 = vld [vmem:[%s1756_s1 + $0xd0] ss:$8 sps:$4 sm:$0xff]   ;;  %v1211_v60 = vld [vmem:[%s1756_s1 + $0xe4] ss:$8 sps:$4 sm:$0xff]   ;;  %v1215_v62 = vld [vmem:[%s1756_s1 + $0xe0] ss:$8 sps:$4 sm:$0xff]  }
  0x15   :  { %903 = vmatprep.subr.bf16.mxu0 %v1159_v21  ;;  %843 = vmatprep.mubr.bf16.mxu1 %v982_v48  ;;  %v1210_v59 = vld [vmem:[%s1756_s1 + $0x2d0] ss:$8 sps:$4 sm:$0xff]   ;;  %v1213_v61 = vld [vmem:[%s1756_s1 + $0x2e4] ss:$8 sps:$4 sm:$0xff]   ;;  %v1216_v63 = vld [vmem:[%s1756_s1 + $0x2e0] ss:$8 sps:$4 sm:$0xff]  }
  0x16   :  { %925 = vmatprep.mubr.bf16.mxu0 %v986_v53  ;;  %v1217_v0 = vld [vmem:[%s1756_s1 + $0xf4] ss:$8 sps:$4 sm:$0xff]   ;;  %v1221_v2 = vld [vmem:[%s1756_s1 + $0xf0] ss:$8 sps:$4 sm:$0xff]   ;;  %v1227_v4 = vld [vmem:[%s1756_s1 + $0x104] ss:$8 sps:$4 sm:$0xff]  }
  0x17   :  { %822 = vmatpush1.bf16.msra.mxu1 %v1161_v22  ;;  %v1219_v1 = vld [vmem:[%s1756_s1 + $0x2f4] ss:$8 sps:$4 sm:$0xff]   ;;  %v1222_v3 = vld [vmem:[%s1756_s1 + $0x2f0] ss:$8 sps:$4 sm:$0xff]   ;;  %v1232_v5 = vld [vmem:[%s1756_s1 + $0x304] ss:$8 sps:$4 sm:$0xff]  }
  0x18   :  { %904 = vmatpush1.bf16.msra.mxu0 %v1162_v23  ;;  %823 = vmatprep.subr.bf16.mxu1 %v1163_v24  ;;  %v1225_v8 = vld [vmem:[%s1756_s1 + $0x100] ss:$8 sps:$4 sm:$0xff]   ;;  %v1235_v10 = vld [vmem:[%s1756_s1 + $0x114] ss:$8 sps:$4 sm:$0xff]   ;;  %v1233_v12 = vld [vmem:[%s1756_s1 + $0x110] ss:$8 sps:$4 sm:$0xff]  }
  0x19   :  { %905 = vmatprep.subr.bf16.mxu0 %v1165_v25  ;;  %v1230_v9 = vld [vmem:[%s1756_s1 + $0x300] ss:$8 sps:$4 sm:$0xff]   ;;  %v1238_v11 = vld [vmem:[%s1756_s1 + $0x314] ss:$8 sps:$4 sm:$0xff]   ;;  %v1236_v13 = vld [vmem:[%s1756_s1 + $0x310] ss:$8 sps:$4 sm:$0xff]  }
  0x1a   :  { %v1241_v14 = vld [vmem:[%s1756_s1 + $0x124] ss:$8 sps:$4 sm:$0xff]   ;;  %v1239_v16 = vld [vmem:[%s1756_s1 + $0x120] ss:$8 sps:$4 sm:$0xff]   ;;  %v1247_v18 = vld [vmem:[%s1756_s1 + $0x134] ss:$8 sps:$4 sm:$0xff]  }
  0x1b   :  { %824 = vmatpush1.bf16.msra.mxu1 %v1167_v26  ;;  %v1244_v15 = vld [vmem:[%s1756_s1 + $0x324] ss:$8 sps:$4 sm:$0xff]   ;;  %v1242_v17 = vld [vmem:[%s1756_s1 + $0x320] ss:$8 sps:$4 sm:$0xff]   ;;  %v1250_v19 = vld [vmem:[%s1756_s1 + $0x334] ss:$8 sps:$4 sm:$0xff]  }
  0x1c   :  { %906 = vmatpush1.bf16.msra.mxu0 %v1168_v27  ;;  %825 = vmatprep.subr.bf16.mxu1 %v1169_v28  ;;  %v1245_v20 = vld [vmem:[%s1756_s1 + $0x130] ss:$8 sps:$4 sm:$0xff]   ;;  %v1253_v22 = vld [vmem:[%s1756_s1 + $0x144] ss:$8 sps:$4 sm:$0xff]   ;;  %v1251_v24 = vld [vmem:[%s1756_s1 + $0x140] ss:$8 sps:$4 sm:$0xff]  }
  0x1d   :  { %907 = vmatprep.subr.bf16.mxu0 %v1171_v29  ;;  %v1248_v21 = vld [vmem:[%s1756_s1 + $0x330] ss:$8 sps:$4 sm:$0xff]   ;;  %v1256_v23 = vld [vmem:[%s1756_s1 + $0x344] ss:$8 sps:$4 sm:$0xff]   ;;  %v1254_v25 = vld [vmem:[%s1756_s1 + $0x340] ss:$8 sps:$4 sm:$0xff]  }
  0x1e   :  { %v1259_v26 = vld [vmem:[%s1756_s1 + $0x154] ss:$8 sps:$4 sm:$0xff]   ;;  %v1257_v28 = vld [vmem:[%s1756_s1 + $0x150] ss:$8 sps:$4 sm:$0xff]   ;;  %v1289_v50 = vld [vmem:[%s1756_s1 + $0x1a4] ss:$8 sps:$4 sm:$0xff]  }
  0x1f   :  { %826 = vmatpush1.bf16.msra.mxu1 %v1173_v30  ;;  %v1262_v27 = vld [vmem:[%s1756_s1 + $0x354] ss:$8 sps:$4 sm:$0xff]   ;;  %v1260_v29 = vld [vmem:[%s1756_s1 + $0x350] ss:$8 sps:$4 sm:$0xff]   ;;  %v1265_v30 = vld [vmem:[%s1756_s1 + $0x164] ss:$8 sps:$4 sm:$0xff]  }
  0x20   :  { %908 = vmatpush1.bf16.msra.mxu0 %v1174_v31  ;;  %827 = vmatprep.subr.bf16.mxu1 %v1175_v32  ;;  %v1268_v31 = vld [vmem:[%s1756_s1 + $0x364] ss:$8 sps:$4 sm:$0xff]   ;;  %v1283_v46 = vld [vmem:[%s1756_s1 + $0x194] ss:$8 sps:$4 sm:$0xff]   ;;  %v1281_v48 = vld [vmem:[%s1756_s1 + $0x190] ss:$8 sps:$4 sm:$0xff]  }
  0x21   :  { %909 = vmatprep.subr.bf16.mxu0 %v1177_v33  ;;  %v1621_v32 = vld [vmem:[%s1757_s0 + $0x8] sm:$0xff]  ;;  %v1626_v33 = vld [vmem:[%s1757_s0 + $0x18] sm:$0xff] }
  0x22   :  { %v1290_v53 = vld [vmem:[%s1756_s1 + $0x3a0] ss:$8 sps:$4 sm:$0xff]  }
  0x23   :  { %828 = vmatpush1.bf16.msra.mxu1 %v1179_v34  ;;  %v984_v34 = vcombine.high %v1621_v32, %v1621_v32 }
  0x24   :  { %910 = vmatpush1.bf16.msra.mxu0 %v1180_v35  ;;  %829 = vmatprep.subr.bf16.mxu1 %v1181_v36  ;;  %v988_v35 = vcombine.high %v1626_v33, %v1626_v33  ;;  %v1263_v36 = vld [vmem:[%s1756_s1 + $0x160] ss:$8 sps:$4 sm:$0xff]  }
  0x25   :  { %911 = vmatprep.subr.bf16.mxu0 %v1183_v37  ;;  %v1266_v37 = vld [vmem:[%s1756_s1 + $0x360] ss:$8 sps:$4 sm:$0xff]  }
  0x27   :  { %830 = vmatpush1.bf16.msra.mxu1 %v1185_v38  ;;  %v1271_v38 = vld [vmem:[%s1756_s1 + $0x174] ss:$8 sps:$4 sm:$0xff]  }
  0x28   :  { %912 = vmatpush1.bf16.msra.mxu0 %v1186_v39  ;;  %831 = vmatprep.subr.bf16.mxu1 %v1187_v40  ;;  %v1274_v39 = vld [vmem:[%s1756_s1 + $0x374] ss:$8 sps:$4 sm:$0xff]   ;;  %v1269_v40 = vld [vmem:[%s1756_s1 + $0x170] ss:$8 sps:$4 sm:$0xff]  }
  0x29   :  { %913 = vmatprep.subr.bf16.mxu0 %v1189_v41  ;;  %v1272_v41 = vld [vmem:[%s1756_s1 + $0x370] ss:$8 sps:$4 sm:$0xff]  }
  0x2b   :  { %832 = vmatpush1.bf16.msra.mxu1 %v1191_v42  ;;  %v1277_v42 = vld [vmem:[%s1756_s1 + $0x184] ss:$8 sps:$4 sm:$0xff]  }
  0x2c   :  { %914 = vmatpush1.bf16.msra.mxu0 %v1192_v43  ;;  %833 = vmatprep.subr.bf16.mxu1 %v1193_v44  ;;  %v1280_v43 = vld [vmem:[%s1756_s1 + $0x384] ss:$8 sps:$4 sm:$0xff]   ;;  %v1275_v44 = vld [vmem:[%s1756_s1 + $0x180] ss:$8 sps:$4 sm:$0xff]  }
  0x2d   :  { %915 = vmatprep.subr.bf16.mxu0 %v1195_v45  ;;  %v1278_v45 = vld [vmem:[%s1756_s1 + $0x380] ss:$8 sps:$4 sm:$0xff]  }
  0x2f   :  { %834 = vmatpush1.bf16.msra.mxu1 %v1197_v47  ;;  %v1286_v47 = vld [vmem:[%s1756_s1 + $0x394] ss:$8 sps:$4 sm:$0xff]  }
  0x30   :  { %916 = vmatpush1.bf16.msra.mxu0 %v1198_v49  ;;  %835 = vmatprep.subr.bf16.mxu1 %v1199_v51  ;;  %v1284_v49 = vld [vmem:[%s1756_s1 + $0x390] ss:$8 sps:$4 sm:$0xff]   ;;  %v1292_v51 = vld [vmem:[%s1756_s1 + $0x3a4] ss:$8 sps:$4 sm:$0xff]  }
  0x31   :  { %917 = vmatprep.subr.bf16.mxu0 %v1201_v52  ;;  %v1287_v52 = vld [vmem:[%s1756_s1 + $0x1a0] ss:$8 sps:$4 sm:$0xff]  }
  0x33   :  { %836 = vmatpush1.bf16.msra.mxu1 %v1203_v54  ;;  %v1295_v54 = vld [vmem:[%s1756_s1 + $0x1b4] ss:$8 sps:$4 sm:$0xff]  }
  0x34   :  { %918 = vmatpush1.bf16.msra.mxu0 %v1204_v55  ;;  %837 = vmatprep.subr.bf16.mxu1 %v1205_v56  ;;  %v1298_v55 = vld [vmem:[%s1756_s1 + $0x3b4] ss:$8 sps:$4 sm:$0xff]   ;;  %v1293_v56 = vld [vmem:[%s1756_s1 + $0x1b0] ss:$8 sps:$4 sm:$0xff]  }
  0x35   :  { %919 = vmatprep.subr.bf16.mxu0 %v1207_v57  ;;  %v1296_v57 = vld [vmem:[%s1756_s1 + $0x3b0] ss:$8 sps:$4 sm:$0xff]  }
  0x37   :  { %838 = vmatpush1.bf16.msra.mxu1 %v1209_v58  ;;  %v1301_v58 = vld [vmem:[%s1756_s1 + $0x1c4] ss:$8 sps:$4 sm:$0xff]  }
  0x38   :  { %920 = vmatpush1.bf16.msra.mxu0 %v1210_v59  ;;  %839 = vmatprep.subr.bf16.mxu1 %v1211_v60  ;;  %v1304_v59 = vld [vmem:[%s1756_s1 + $0x3c4] ss:$8 sps:$4 sm:$0xff]   ;;  %v1299_v60 = vld [vmem:[%s1756_s1 + $0x1c0] ss:$8 sps:$4 sm:$0xff]  }
  0x39   :  { %921 = vmatprep.subr.bf16.mxu0 %v1213_v61  ;;  %v1302_v61 = vld [vmem:[%s1756_s1 + $0x3c0] ss:$8 sps:$4 sm:$0xff]  }
  0x3b   :  { %840 = vmatpush1.bf16.msra.mxu1 %v1215_v62  ;;  %v1307_v62 = vld [vmem:[%s1756_s1 + $0x1d4] ss:$8 sps:$4 sm:$0xff]  }
  0x3c   :  { %922 = vmatpush1.bf16.msra.mxu0 %v1216_v63  ;;  %841 = vmatprep.subr.bf16.mxu1 %v1217_v0  ;;  %v1310_v63 = vld [vmem:[%s1756_s1 + $0x3d4] ss:$8 sps:$4 sm:$0xff]   ;;  %v1305_v0 = vld [vmem:[%s1756_s1 + $0x1d0] ss:$8 sps:$4 sm:$0xff]  }
  0x3d   :  { %923 = vmatprep.subr.bf16.mxu0 %v1219_v1  ;;  %v1308_v1 = vld [vmem:[%s1756_s1 + $0x3d0] ss:$8 sps:$4 sm:$0xff]  }
  0x3f   :  { %842 = vmatpush1.bf16.msra.mxu1 %v1221_v2  ;;  %v1313_v2 = vld [vmem:[%s1756_s1 + $0x1e4] ss:$8 sps:$4 sm:$0xff]  }
  0x40   :  { %924 = vmatpush1.bf16.msra.mxu0 %v1222_v3  ;;  %852 = vmatprep.subr.bf16.mxu1 %v1227_v4  ;;  %v1316_v3 = vld [vmem:[%s1756_s1 + $0x3e4] ss:$8 sps:$4 sm:$0xff]   ;;  %v1311_v4 = vld [vmem:[%s1756_s1 + $0x1e0] ss:$8 sps:$4 sm:$0xff]  }
  0x41   :  { %934 = vmatprep.subr.bf16.mxu0 %v1232_v5  ;;  %v1314_v5 = vld [vmem:[%s1756_s1 + $0x3e0] ss:$8 sps:$4 sm:$0xff]  }
  0x42   :  { %844 = vmatmul.mubr.bf16.vlgmr.msra.gmra.mrb[0].mxu1 %v981_v6  ;;  %v1319_v6 = vld [vmem:[%s1756_s1 + $0x1f4] ss:$8 sps:$4 sm:$0xff]  }
  0x43   :  { %926 = vmatmul.mubr.bf16.vlgmr.msra.gmra.mrb[0].mxu0 %v985_v7  ;;  %853 = vmatpush1.bf16.msra.mxu1 %v1225_v8  ;;  %v1322_v7 = vld [vmem:[%s1756_s1 + $0x3f4] ss:$8 sps:$4 sm:$0xff]   ;;  %v1317_v8 = vld [vmem:[%s1756_s1 + $0x1f0] ss:$8 sps:$4 sm:$0xff]  }
  0x44   :  { %935 = vmatpush1.bf16.msra.mxu0 %v1230_v9  ;;  %854 = vmatprep.subr.bf16.mxu1 %v1235_v10  ;;  %v1320_v9 = vld [vmem:[%s1756_s1 + $0x3f0] ss:$8 sps:$4 sm:$0xff]   ;;  %v983_v10 = vcombine.low %v1621_v32, %v1621_v32 }
  0x45   :  { %936 = vmatprep.subr.bf16.mxu0 %v1238_v11  ;;  %884 = vmatprep.mubr.bf16.mxu1 %v984_v34  ;;  %v987_v11 = vcombine.low %v1626_v33, %v1626_v33 }
  0x46   :  { %966 = vmatprep.mubr.bf16.mxu0 %v988_v35 }
  0x47   :  { %855 = vmatpush1.bf16.msra.mxu1 %v1233_v12 }
  0x48   :  { %937 = vmatpush1.bf16.msra.mxu0 %v1236_v13  ;;  %856 = vmatprep.subr.bf16.mxu1 %v1241_v14 }
  0x49   :  { %938 = vmatprep.subr.bf16.mxu0 %v1244_v15 }
  0x4b   :  { %857 = vmatpush1.bf16.msra.mxu1 %v1239_v16 }
  0x4c   :  { %939 = vmatpush1.bf16.msra.mxu0 %v1242_v17  ;;  %858 = vmatprep.subr.bf16.mxu1 %v1247_v18 }
  0x4d   :  { %940 = vmatprep.subr.bf16.mxu0 %v1250_v19 }
  0x4f   :  { %859 = vmatpush1.bf16.msra.mxu1 %v1245_v20 }
  0x50   :  { %941 = vmatpush1.bf16.msra.mxu0 %v1248_v21  ;;  %860 = vmatprep.subr.bf16.mxu1 %v1253_v22 }
  0x51   :  { %942 = vmatprep.subr.bf16.mxu0 %v1256_v23 }
  0x53   :  { %861 = vmatpush1.bf16.msra.mxu1 %v1251_v24 }
  0x54   :  { %943 = vmatpush1.bf16.msra.mxu0 %v1254_v25  ;;  %862 = vmatprep.subr.bf16.mxu1 %v1259_v26 }
  0x55   :  { %944 = vmatprep.subr.bf16.mxu0 %v1262_v27 }
  0x57   :  { %863 = vmatpush1.bf16.msra.mxu1 %v1257_v28 }
  0x58   :  { %945 = vmatpush1.bf16.msra.mxu0 %v1260_v29  ;;  %864 = vmatprep.subr.bf16.mxu1 %v1265_v30 }
  0x59   :  { %946 = vmatprep.subr.bf16.mxu0 %v1268_v31 }
  0x5b   :  { %865 = vmatpush1.bf16.msra.mxu1 %v1263_v36 }
  0x5c   :  { %947 = vmatpush1.bf16.msra.mxu0 %v1266_v37  ;;  %866 = vmatprep.subr.bf16.mxu1 %v1271_v38 }
  0x5d   :  { %948 = vmatprep.subr.bf16.mxu0 %v1274_v39 }
  0x5f   :  { %867 = vmatpush1.bf16.msra.mxu1 %v1269_v40 }
  0x60   :  { %949 = vmatpush1.bf16.msra.mxu0 %v1272_v41  ;;  %868 = vmatprep.subr.bf16.mxu1 %v1277_v42 }
  0x61   :  { %950 = vmatprep.subr.bf16.mxu0 %v1280_v43 }
  0x63   :  { %869 = vmatpush1.bf16.msra.mxu1 %v1275_v44 }
  0x64   :  { %951 = vmatpush1.bf16.msra.mxu0 %v1278_v45  ;;  %870 = vmatprep.subr.bf16.mxu1 %v1283_v46 }
  0x65   :  { %952 = vmatprep.subr.bf16.mxu0 %v1286_v47 }
  0x67   :  { %871 = vmatpush1.bf16.msra.mxu1 %v1281_v48 }
  0x68   :  { %953 = vmatpush1.bf16.msra.mxu0 %v1284_v49  ;;  %872 = vmatprep.subr.bf16.mxu1 %v1289_v50 }
  0x69   :  { %954 = vmatprep.subr.bf16.mxu0 %v1292_v51 }
  0x6b   :  { %873 = vmatpush1.bf16.msra.mxu1 %v1287_v52 }
  0x6c   :  { %955 = vmatpush1.bf16.msra.mxu0 %v1290_v53  ;;  %874 = vmatprep.subr.bf16.mxu1 %v1295_v54 }
  0x6d   :  { %956 = vmatprep.subr.bf16.mxu0 %v1298_v55 }
  0x6f   :  { %875 = vmatpush1.bf16.msra.mxu1 %v1293_v56 }
  0x70   :  { %957 = vmatpush1.bf16.msra.mxu0 %v1296_v57  ;;  %876 = vmatprep.subr.bf16.mxu1 %v1301_v58 }
  0x71   :  { %958 = vmatprep.subr.bf16.mxu0 %v1304_v59 }
  0x73   :  { %877 = vmatpush1.bf16.msra.mxu1 %v1299_v60 }
  0x74   :  { %959 = vmatpush1.bf16.msra.mxu0 %v1302_v61  ;;  %878 = vmatprep.subr.bf16.mxu1 %v1307_v62 }
  0x75   :  { %960 = vmatprep.subr.bf16.mxu0 %v1310_v63 }
  0x77   :  { %879 = vmatpush1.bf16.msra.mxu1 %v1305_v0 }
  0x78   :  { %961 = vmatpush1.bf16.msra.mxu0 %v1308_v1  ;;  %880 = vmatprep.subr.bf16.mxu1 %v1313_v2 }
  0x79   :  { %962 = vmatprep.subr.bf16.mxu0 %v1316_v3 }
  0x7b   :  { %881 = vmatpush1.bf16.msra.mxu1 %v1311_v4 }
  0x7c   :  { %963 = vmatpush1.bf16.msra.mxu0 %v1314_v5  ;;  %882 = vmatprep.subr.bf16.mxu1 %v1319_v6 }
  0x7d   :  { %964 = vmatprep.subr.bf16.mxu0 %v1322_v7 }
  0x7f   :  { %883 = vmatpush1.bf16.msra.mxu1 %v1317_v8 }
  0x80   :  { %965 = vmatpush1.bf16.msra.mxu0 %v1320_v9 }
  0x82   :  { %885 = vmatmul.mubr.bf16.vlgmr.msra.gmra.mrb[0].mxu1 %v983_v10 }
  0x83   :  { %967 = vmatmul.mubr.bf16.vlgmr.msra.gmra.mrb[0].mxu0 %v987_v11 }
 0x155   :  { %v886_v12 = vpop.f32.mrb[0].mxu1 }
 0x156   :  { %v968_v13 = vpop.f32.mrb[0].mxu0  ;;  %v888_v15 = vpop.f32.mrb[1].mxu1 }
 0x157   :  { %v1117_v14 = vadd.f32 %v968_v13, %v886_v12  ;;  %v970_v16 = vpop.f32.mrb[1].mxu0  ;;  %v890_v18 = vpop.f32.mrb[2].mxu1 }
 0x158   :  { %v1118_v17 = vadd.f32 %v970_v16, %v888_v15  ;;  %v972_v19 = vpop.f32.mrb[2].mxu0  ;;  %v891_v20 = vpop.f32.mrb[3].mxu1 }
 0x159   :  { %975 = vst [vmem:[%s1758_s2] sm:$0xff] %v1117_v14  ;;  %v973_v21 = vpop.f32.mrb[3].mxu0 }
 0x15a   :  { %976 = vst [vmem:[%s1758_s2 + $0x8] sm:$0xff] %v1118_v17 }

</bundles_post_ra>
